<compile_context>
chip_gen: v7x
topology: tpu7x:2x2x1
jax: 0.10.0
libtpu: 0.0.40
codegen_flags: <defaults>
</compile_context>

<pallas_src>
import jax
import jax.numpy as jnp
from jax.experimental import pallas as pl
from jax.experimental.pallas import tpu as pltpu

H1_LOGICAL, H2_LOGICAL = 400, 300


def _round_up(x, m):
    return ((x + m - 1) // m) * m


def _actor_kernel(scal_ref,          # SMEM (2,) f32: [max_action, phi]
                  sa_ref,            # [TB, SAP] bf16  packed [state ‖ action]
                  act_ref,           # [TB, AP]  f32   action (for phi-mix)
                  w1_ref, b1_ref,    # [SAP, H1] bf16, [1, H1] f32
                  w2_ref, b2_ref,    # [H1, H2]  bf16, [1, H2] f32
                  w3_ref, b3_ref,    # [H2, AP]  bf16, [1, AP] f32
                  out_ref):          # [TB, AP]  f32
    max_action = scal_ref[0]
    phi = scal_ref[1]

    act_f32 = act_ref[...]                              # f32, for the mix only

    # l1 + relu (single merged matmul; concat done lane-dense in the wrapper)
    h1 = jnp.dot(sa_ref[...], w1_ref[...], preferred_element_type=jnp.float32)
    h1 = jnp.maximum(h1 + b1_ref[...], 0.0)             # [TB, H1] f32

    # l2 + relu
    h2 = jnp.dot(h1.astype(jnp.bfloat16), w2_ref[...],
                 preferred_element_type=jnp.float32)
    h2 = jnp.maximum(h2 + b2_ref[...], 0.0)             # [TB, H2] f32

    # l3 + tanh, scaled by max_action
    a = jnp.dot(h2.astype(jnp.bfloat16), w3_ref[...],
                preferred_element_type=jnp.float32)
    a = max_action * jnp.tanh(a + b3_ref[...])          # [TB, AP] f32

    # perturbation mix; padded lanes stay exactly 0 (a == 0 and act == 0 there)
    out_ref[...] = phi * a + (1.0 - phi) * act_f32


def init_actor_params(key, state_dim, action_dim):
    """Deterministic init matching nn.Linear default (uniform +/- 1/sqrt(fan_in)).

    Weights are stored transposed ([in, out]) so the kernel computes x @ W + b.
    """
    dims = [(state_dim + action_dim, H1_LOGICAL),
            (H1_LOGICAL, H2_LOGICAL),
            (H2_LOGICAL, action_dim)]
    params = {}
    for i, (fan_in, fan_out) in enumerate(dims, start=1):
        key, kw, kb = jax.random.split(key, 3)
        bound = 1.0 / jnp.sqrt(float(fan_in))
        params[f"w{i}"] = jax.random.uniform(
            kw, (fan_in, fan_out), jnp.float32, -bound, bound)
        params[f"b{i}"] = jax.random.uniform(
            kb, (1, fan_out), jnp.float32, -bound, bound)
    return params


def prepare_actor_params(params, state_dim, action_dim):
    """Zero-pad to lane multiples and cast matmul weights to bf16.

    Zero rows/columns are identity through ReLU/tanh, so results are unchanged.
    Done once, outside the hot path.
    """
    SA = state_dim + action_dim
    SAP = _round_up(SA, 128)
    AP = _round_up(action_dim, 128)
    H1 = _round_up(H1_LOGICAL, 128)    # 512
    H2 = _round_up(H2_LOGICAL, 128)    # 384

    w1 = jnp.zeros((SAP, H1), jnp.float32).at[:SA, :H1_LOGICAL].set(params["w1"])
    b1 = jnp.zeros((1, H1), jnp.float32).at[:, :H1_LOGICAL].set(params["b1"])
    w2 = jnp.zeros((H1, H2), jnp.float32).at[:H1_LOGICAL, :H2_LOGICAL].set(
        params["w2"])
    b2 = jnp.zeros((1, H2), jnp.float32).at[:, :H2_LOGICAL].set(params["b2"])
    w3 = jnp.zeros((H2, AP), jnp.float32).at[:H2_LOGICAL, :action_dim].set(
        params["w3"])
    b3 = jnp.zeros((1, AP), jnp.float32).at[:, :action_dim].set(params["b3"])

    return dict(
        w1=w1.astype(jnp.bfloat16), b1=b1,
        w2=w2.astype(jnp.bfloat16), b2=b2,
        w3=w3.astype(jnp.bfloat16), b3=b3,
    )


def actor_forward(state, action, prepared, max_action=1.0, phi=0.05):
    """Pallas implementation of Actor.forward.

    state:  [B, state_dim]  f32
    action: [B, action_dim] f32
    prepared: output of prepare_actor_params (lane-padded, bf16 weights)
    """
    B, state_dim = state.shape
    action_dim = action.shape[1]
    SA = state_dim + action_dim

    w1, b1 = prepared["w1"], prepared["b1"]
    w2, b2 = prepared["w2"], prepared["b2"]
    w3, b3 = prepared["w3"], prepared["b3"]
    SAP, H1 = w1.shape
    H2, AP = w3.shape

    # Batch tiling: >= 2 grid steps when possible (megacore sharding on v7x),
    # large tiles at large B (amortize ~0.35us/step), multiple of 16 for bf16.
    TB = max(16, min(1024, _round_up(pl.cdiv(B, 2), 16)))
    B_pad = _round_up(B, TB)
    grid = (B_pad // TB,)

    # Packed lane-dense bf16 [state ‖ action] tile for the matmuls; separate
    # f32 action tile for the phi-mix.  Pad rows/lanes contribute zeros.
    sa = jnp.concatenate([state, action], axis=1)                      # [B, SA]
    sa_p = jnp.zeros((B_pad, SAP), jnp.bfloat16).at[:B, :SA].set(
        sa.astype(jnp.bfloat16))
    action_p = jnp.zeros((B_pad, AP), jnp.float32).at[:B, :action_dim].set(action)

    # Runtime scalars in SMEM: new (max_action, phi) values do not retrace.
    scalars = jnp.array([max_action, phi], dtype=jnp.float32)

    def _resident(arr):  # full-array block, constant index -> stays in VMEM
        return pl.BlockSpec(arr.shape, lambda i: (0,) * arr.ndim)

    def _nbytes(a):
        return int(a.size) * a.dtype.itemsize

    weight_bytes = sum(_nbytes(a) for a in (w1, b1, w2, b2, w3, b3))
    cost = pl.CostEstimate(
        flops=2 * B_pad * (SAP * H1 + H1 * H2 + H2 * AP),
        transcendentals=B_pad * AP,                      # tanh
        bytes_accessed=_nbytes(sa_p) + _nbytes(action_p) + weight_bytes
        + B_pad * AP * 4,
    )

    out_p = pl.pallas_call(
        _actor_kernel,
        out_shape=jax.ShapeDtypeStruct((B_pad, AP), jnp.float32),
        grid=grid,
        in_specs=[
            pl.BlockSpec(memory_space=pltpu.MemorySpace.SMEM),   # scalars
            pl.BlockSpec((TB, SAP), lambda i: (i, 0)),           # packed s‖a
            pl.BlockSpec((TB, AP), lambda i: (i, 0)),            # action (f32)
            _resident(w1), _resident(b1),
            _resident(w2), _resident(b2),
            _resident(w3), _resident(b3),
        ],
        out_specs=pl.BlockSpec((TB, AP), lambda i: (i, 0)),
        compiler_params=pltpu.CompilerParams(
            dimension_semantics=("parallel",)),
        cost_estimate=cost,
    )(scalars, sa_p, action_p, w1, b1, w2, b2, w3, b3)

    return out_p[:B, :action_dim]


def actor_reference_f32(state, action, params, max_action=1.0, phi=0.05):
    sa = jnp.concatenate([state, action], axis=1)
    h1 = jax.nn.relu(sa @ params["w1"] + params["b1"])
    h2 = jax.nn.relu(h1 @ params["w2"] + params["b2"])
    a = max_action * jnp.tanh(h2 @ params["w3"] + params["b3"])
    return phi * a + (1.0 - phi) * action


def actor_reference_bf16(state, action, params, max_action=1.0, phi=0.05):
    # Same math precision as the kernel: bf16 matmul operands, f32 accumulation.
    def dot(x, w):
        return jnp.dot(x.astype(jnp.bfloat16), w.astype(jnp.bfloat16),
                       preferred_element_type=jnp.float32)
    sa = jnp.concatenate([state, action], axis=1)
    h1 = jax.nn.relu(dot(sa, params["w1"]) + params["b1"])
    h2 = jax.nn.relu(dot(h1, params["w2"]) + params["b2"])
    a = max_action * jnp.tanh(dot(h2, params["w3"]) + params["b3"])
    return phi * a + (1.0 - phi) * action


if __name__ == "__main__":
    state_dim, action_dim, batch = 16, 8, 8
    max_action, phi = 1.0, 0.05

    key = jax.random.PRNGKey(0)
    key, ks, ka, kp = jax.random.split(key, 4)
    state = jax.random.normal(ks, (batch, state_dim), jnp.float32)
    action = jax.random.normal(ka, (batch, action_dim), jnp.float32)
    params = init_actor_params(kp, state_dim, action_dim)
    prepared = prepare_actor_params(params, state_dim, action_dim)

    out = actor_forward(state, action, prepared, max_action=max_action, phi=phi)
    out = jax.block_until_ready(out)

    ref_bf16 = actor_reference_bf16(state, action, params, max_action, phi)
    ref_f32 = actor_reference_f32(state, action, params, max_action, phi)

    assert out.shape == (batch, action_dim)
    assert jnp.allclose(out, ref_bf16, atol=2e-3, rtol=2e-3), \
        "mismatch vs precision-matched (bf16 matmul) reference"
    assert jnp.allclose(out, ref_f32, atol=2e-2, rtol=2e-2), \
        "mismatch vs full-f32 reference"

    print("KERNEL_OK")
</pallas_src>

<mosaic_0001>
module attributes {stable_mosaic.version = 11 : i64} {
  func.func @_actor_kernel(%arg0: i32, %arg1: memref<2xf32, #tpu.memory_space<smem>>, %arg2: memref<16x128xbf16, #tpu.memory_space<vmem>>, %arg3: memref<16x128xf32, #tpu.memory_space<vmem>>, %arg4: memref<128x512xbf16, #tpu.memory_space<vmem>>, %arg5: memref<1x512xf32, #tpu.memory_space<vmem>>, %arg6: memref<512x384xbf16, #tpu.memory_space<vmem>>, %arg7: memref<1x384xf32, #tpu.memory_space<vmem>>, %arg8: memref<384x128xbf16, #tpu.memory_space<vmem>>, %arg9: memref<1x128xf32, #tpu.memory_space<vmem>>, %arg10: memref<16x128xf32, #tpu.memory_space<vmem>>) attributes {dimension_semantics = [#tpu.dimension_semantics<parallel>], iteration_bounds = array<i64: 1>, scalar_prefetch = 0 : i64, scratch_operands = 0 : i64, tpu.core_type = #tpu.core_type<tc>, window_params = [{transform_indices = @transform_0, window_bounds = array<i64: 2>}, {transform_indices = @transform_1, window_bounds = array<i64: 16, 128>}, {transform_indices = @transform_2, window_bounds = array<i64: 16, 128>}, {pipeline_mode = #tpu.pipeline_mode<synchronous>, transform_indices = @transform_3, window_bounds = array<i64: 128, 512>}, {pipeline_mode = #tpu.pipeline_mode<synchronous>, transform_indices = @transform_4, window_bounds = array<i64: 1, 512>}, {pipeline_mode = #tpu.pipeline_mode<synchronous>, transform_indices = @transform_5, window_bounds = array<i64: 512, 384>}, {pipeline_mode = #tpu.pipeline_mode<synchronous>, transform_indices = @transform_6, window_bounds = array<i64: 1, 384>}, {pipeline_mode = #tpu.pipeline_mode<synchronous>, transform_indices = @transform_7, window_bounds = array<i64: 384, 128>}, {pipeline_mode = #tpu.pipeline_mode<synchronous>, transform_indices = @transform_8, window_bounds = array<i64: 1, 128>}, {transform_indices = @transform_9, window_bounds = array<i64: 16, 128>}]} {
    %c0 = arith.constant 0 : index
    %0 = memref.load %arg1[%c0] : memref<2xf32, #tpu.memory_space<smem>>
    %c1 = arith.constant 1 : index
    %1 = memref.load %arg1[%c1] : memref<2xf32, #tpu.memory_space<smem>>
    %c0_0 = arith.constant 0 : index
    %c0_1 = arith.constant 0 : index
    %2 = vector.load %arg3[%c0_0, %c0_1] : memref<16x128xf32, #tpu.memory_space<vmem>>, vector<16x128xf32>
    %c0_2 = arith.constant 0 : index
    %c0_3 = arith.constant 0 : index
    %3 = vector.load %arg2[%c0_2, %c0_3] : memref<16x128xbf16, #tpu.memory_space<vmem>>, vector<16x128xbf16>
    %c0_4 = arith.constant 0 : index
    %c0_5 = arith.constant 0 : index
    %4 = vector.load %arg4[%c0_4, %c0_5] : memref<128x512xbf16, #tpu.memory_space<vmem>>, vector<128x512xbf16>
    %cst = arith.constant dense<0.000000e+00> : vector<16x512xf32>
    %5 = tpu.matmul %3, %4, %cst {dimension_numbers = #tpu.dot_dimension_numbers<[1], [0], [0], [1], [0, 0, 1, 1], [], []>} : vector<16x128xbf16>, vector<128x512xbf16>, vector<16x512xf32> -> vector<16x512xf32>
    %c0_6 = arith.constant 0 : index
    %c0_7 = arith.constant 0 : index
    %6 = vector.load %arg5[%c0_6, %c0_7] : memref<1x512xf32, #tpu.memory_space<vmem>>, vector<1x512xf32>
    %7 = vector.broadcast %6 : vector<1x512xf32> to vector<16x512xf32>
    %8 = arith.addf %5, %7 : vector<16x512xf32>
    %cst_8 = arith.constant 0.000000e+00 : f32
    %9 = vector.broadcast %cst_8 : f32 to vector<16x512xf32>
    %10 = arith.maximumf %8, %9 : vector<16x512xf32>
    %11 = arith.truncf %10 : vector<16x512xf32> to vector<16x512xbf16>
    %c0_9 = arith.constant 0 : index
    %c0_10 = arith.constant 0 : index
    %12 = vector.load %arg6[%c0_9, %c0_10] : memref<512x384xbf16, #tpu.memory_space<vmem>>, vector<512x384xbf16>
    %cst_11 = arith.constant dense<0.000000e+00> : vector<16x384xf32>
    %13 = tpu.matmul %11, %12, %cst_11 {dimension_numbers = #tpu.dot_dimension_numbers<[1], [0], [0], [1], [0, 0, 1, 1], [], []>} : vector<16x512xbf16>, vector<512x384xbf16>, vector<16x384xf32> -> vector<16x384xf32>
    %c0_12 = arith.constant 0 : index
    %c0_13 = arith.constant 0 : index
    %14 = vector.load %arg7[%c0_12, %c0_13] : memref<1x384xf32, #tpu.memory_space<vmem>>, vector<1x384xf32>
    %15 = vector.broadcast %14 : vector<1x384xf32> to vector<16x384xf32>
    %16 = arith.addf %13, %15 : vector<16x384xf32>
    %cst_14 = arith.constant 0.000000e+00 : f32
    %17 = vector.broadcast %cst_14 : f32 to vector<16x384xf32>
    %18 = arith.maximumf %16, %17 : vector<16x384xf32>
    %19 = arith.truncf %18 : vector<16x384xf32> to vector<16x384xbf16>
    %c0_15 = arith.constant 0 : index
    %c0_16 = arith.constant 0 : index
    %20 = vector.load %arg8[%c0_15, %c0_16] : memref<384x128xbf16, #tpu.memory_space<vmem>>, vector<384x128xbf16>
    %cst_17 = arith.constant dense<0.000000e+00> : vector<16x128xf32>
    %21 = tpu.matmul %19, %20, %cst_17 {dimension_numbers = #tpu.dot_dimension_numbers<[1], [0], [0], [1], [0, 0, 1, 1], [], []>} : vector<16x384xbf16>, vector<384x128xbf16>, vector<16x128xf32> -> vector<16x128xf32>
    %c0_18 = arith.constant 0 : index
    %c0_19 = arith.constant 0 : index
    %22 = vector.load %arg9[%c0_18, %c0_19] : memref<1x128xf32, #tpu.memory_space<vmem>>, vector<1x128xf32>
    %23 = vector.broadcast %22 : vector<1x128xf32> to vector<16x128xf32>
    %24 = arith.addf %21, %23 : vector<16x128xf32>
    %25 = math.tanh %24 : vector<16x128xf32>
    %26 = vector.broadcast %0 : f32 to vector<16x128xf32>
    %27 = arith.mulf %26, %25 : vector<16x128xf32>
    %28 = vector.broadcast %1 : f32 to vector<16x128xf32>
    %29 = arith.mulf %28, %27 : vector<16x128xf32>
    %cst_20 = arith.constant 1.000000e+00 : f32
    %30 = arith.subf %cst_20, %1 : f32
    %31 = vector.broadcast %30 : f32 to vector<16x128xf32>
    %32 = arith.mulf %31, %2 : vector<16x128xf32>
    %33 = arith.addf %29, %32 : vector<16x128xf32>
    %c0_21 = arith.constant 0 : index
    %c0_22 = arith.constant 0 : index
    %34 = vector.load %arg10[%c0_21, %c0_22] : memref<16x128xf32, #tpu.memory_space<vmem>>, vector<16x128xf32>
    tpu.vector_store %arg10[%c0_21, %c0_22], %33 {strides = array<i32>} : memref<16x128xf32, #tpu.memory_space<vmem>>, vector<16x128xf32>,
    return
  }
  func.func @transform_0(%arg0: i32) -> i32 {
    %c0_i32 = arith.constant 0 : i32
    %c0_i32_0 = arith.constant 0 : i32
    return %c0_i32 : i32
  }
  func.func @transform_1(%arg0: i32) -> (i32, i32) {
    %c0_i32 = arith.constant 0 : i32
    %c0_i32_0 = arith.constant 0 : i32
    return %arg0, %c0_i32 : i32, i32
  }
  func.func @transform_2(%arg0: i32) -> (i32, i32) {
    %c0_i32 = arith.constant 0 : i32
    %c0_i32_0 = arith.constant 0 : i32
    return %arg0, %c0_i32 : i32, i32
  }
  func.func @transform_3(%arg0: i32) -> (i32, i32) {
    %c0_i32 = arith.constant 0 : i32
    %c0_i32_0 = arith.constant 0 : i32
    %c0_i32_1 = arith.constant 0 : i32
    return %c0_i32, %c0_i32_0 : i32, i32
  }
  func.func @transform_4(%arg0: i32) -> (i32, i32) {
    %c0_i32 = arith.constant 0 : i32
    %c0_i32_0 = arith.constant 0 : i32
    %c0_i32_1 = arith.constant 0 : i32
    return %c0_i32, %c0_i32_0 : i32, i32
  }
  func.func @transform_5(%arg0: i32) -> (i32, i32) {
    %c0_i32 = arith.constant 0 : i32
    %c0_i32_0 = arith.constant 0 : i32
    %c0_i32_1 = arith.constant 0 : i32
    return %c0_i32, %c0_i32_0 : i32, i32
  }
  func.func @transform_6(%arg0: i32) -> (i32, i32) {
    %c0_i32 = arith.constant 0 : i32
    %c0_i32_0 = arith.constant 0 : i32
    %c0_i32_1 = arith.constant 0 : i32
    return %c0_i32, %c0_i32_0 : i32, i32
  }
  func.func @transform_7(%arg0: i32) -> (i32, i32) {
    %c0_i32 = arith.constant 0 : i32
    %c0_i32_0 = arith.constant 0 : i32
    %c0_i32_1 = arith.constant 0 : i32
    return %c0_i32, %c0_i32_0 : i32, i32
  }
  func.func @transform_8(%arg0: i32) -> (i32, i32) {
    %c0_i32 = arith.constant 0 : i32
    %c0_i32_0 = arith.constant 0 : i32
    %c0_i32_1 = arith.constant 0 : i32
    return %c0_i32, %c0_i32_0 : i32, i32
  }
  func.func @transform_9(%arg0: i32) -> (i32, i32) {
    %c0_i32 = arith.constant 0 : i32
    %c0_i32_0 = arith.constant 0 : i32
    return %arg0, %c0_i32 : i32, i32
  }
}

</mosaic_0001>

<bundles_post_ra>
// kernel: tpu_custom_call.1
= control target key start
LH: loop header
LB: loop body
LE: loop exit
PB: predicated region body
PF: predicated region fallthrough
CT: control target
= control target key end

     0   :  { %14 = vsyncpa [#allocation5], 0  ;;  %s2425_s0 = inlined_call_operand.hbm [shape: f32[2], index: 0, kind: input, shape index: {}]   ;;  %s2426_s1 = inlined_call_operand.hbm [shape: bf16[16,128], index: 1, kind: input, shape index: {}]   ;;  %s2427_s2 = inlined_call_operand.hbm [shape: f32[16,128], index: 2, kind: input, shape index: {}]   ;;  %s2428_s3 = inlined_call_operand.hbm [shape: bf16[128,512], index: 3, kind: input, shape index: {}]   ;;  %s2429_s4 = inlined_call_operand.vmem [shape: f32[1,512], index: 4, kind: input, shape index: {}]   ;;  %s2430_s5 = inlined_call_operand.hbm [shape: bf16[512,384], index: 5, kind: input, shape index: {}]   ;;  %s2431_s6 = inlined_call_operand.vmem [shape: f32[1,384], index: 6, kind: input, shape index: {}]   ;;  %s2432_s7 = inlined_call_operand.hbm [shape: bf16[384,128], index: 7, kind: input, shape index: {}]   ;;  %s2433_s8 = inlined_call_operand.vmem [shape: f32[1,128], index: 8, kind: input, shape index: {}]   ;;  %s2434_s9 = inlined_call_operand.hbm [shape: f32[16,128], index: 9, kind: output, shape index: {}]  }
   0x1   :  { %15 = vsyncpa [#allocation3], 0 }
   0x2   :  { %16 = vsyncpa [#allocation8], 0 }
   0x3   :  { %17 = vsyncpa [#allocation11], 0 }
   0x4   :  { %18 = vsyncpa [#allocation4], 0  ;;  %s2221_s30 = smov [#allocation7]   ;;  %s2069_s13 = scalar_lea.hbm %s2427_s2, 256 }
   0x5   :  { %s44_s10 = sshll.u32 %s2221_s30, 4  ;;  %p2070_p0 = scmp.ne.s32.totalorder %s2427_s2, %s2069_s13  ;;  %s45_s10 = int_to_ptr.vmem [resolvable:$true] %s44_s10 }
   0x6   :  { %p2073_p1 = scmp.lt.u32.totalorder %s2069_s13, %s2427_s2 }
   0x8   :  { %p2075_p2 = pnand %p2073_p1, %p2070_p0 }
   0xa   :  { %2078 = shalt.err (!%p2075_p2)
}
   0xb   :  { %s2079_s18 = scalar_lea.vmem %s45_s10, 256  ;;  %p2084_p4 = scmp.lt.s32.totalorder %s45_s10, %s45_s10 }
   0xc   :  { %p2080_p3 = scmp.ne.s32.totalorder %s45_s10, %s2079_s18  ;;  %p2085_p5 = scmp.lt.s32.totalorder %s2079_s18, %s2079_s18 }
   0xe   :  { %p2086_p6 = por %p2085_p5, %p2084_p4 }
  0x10   :  { %p2087_p7 = pnand %p2086_p6, %p2080_p3 }
  0x12   :  { %2090 = shalt.err (!%p2087_p7)
}
  0x13   :  { %s2222_s19 = smov 128   ;;  %s2223_s20 = smov 8  }
  0x14   :  { %50 = dma.hbm_to_vmem [thread:$0]  %s2427_s2, 256, %s45_s10, [#allocation8], %s2222_s19, %s2222_s19, %s2223_s20  }
  0x15   :  { %s2224_s23 = smov [#allocation10]   ;;  %s2091_s27 = scalar_lea.hbm %s2430_s5, 12288 }
  0x16   :  { %s70_s24 = sshll.u32 %s2224_s23, 4  ;;  %p2092_p8 = scmp.ne.s32.totalorder %s2430_s5, %s2091_s27  ;;  %s71_s24 = int_to_ptr.vmem [resolvable:$true] %s70_s24 }
  0x17   :  { %p2095_p9 = scmp.lt.u32.totalorder %s2091_s27, %s2430_s5 }
  0x19   :  { %p2097_p10 = pnand %p2095_p9, %p2092_p8 }
  0x1b   :  { %2100 = shalt.err (!%p2097_p10)
}
  0x1c   :  { %s2101_s12 = scalar_lea.vmem %s71_s24, 12288  ;;  %p2106_p12 = scmp.lt.s32.totalorder %s71_s24, %s71_s24 }
  0x1d   :  { %p2102_p11 = scmp.ne.s32.totalorder %s71_s24, %s2101_s12  ;;  %p2107_p13 = scmp.lt.s32.totalorder %s2101_s12, %s2101_s12 }
  0x1f   :  { %p2108_p0 = por %p2107_p13, %p2106_p12 }
  0x21   :  { %p2109_p1 = pnand %p2108_p0, %p2102_p11 }
  0x23   :  { %2112 = shalt.err (!%p2109_p1)
}
  0x24   :  { %s2225_s2 = smov 192   ;;  %s2226_s10 = smov 12  }
  0x25   :  { %76 = dma.hbm_to_vmem [thread:$0]  %s2430_s5, 12288, %s71_s24, [#allocation11], %s2225_s2, %s2225_s2, %s2226_s10  }
  0x26   :  { %s2113_s17 = scalar_lea.hbm %s2425_s0, 16 }
  0x27   :  { %p2114_p2 = scmp.ne.s32.totalorder %s2425_s0, %s2113_s17  ;;  %p2117_p3 = scmp.lt.u32.totalorder %s2113_s17, %s2425_s0 }
  0x29   :  { %p2119_p4 = pnand %p2117_p3, %p2114_p2 }
  0x2b   :  { %2122 = shalt.err (!%p2119_p4)
}
  0x2c   :  { %s2227_s25 = smov [#allocation2]   ;;  %s2228_s5 = smov [#allocation6]  }
  0x2d   :  { %26 = dma.hbm_to_smem %s2425_s0, 16, %s2227_s25, [#allocation5]  }
  0x2e   :  { %s32_s24 = sshll.u32 %s2228_s5, 4  ;;  %s2123_s30 = scalar_lea.hbm %s2426_s1, 128  ;;  %s33_s24 = int_to_ptr.vmem [resolvable:$true] %s32_s24 }
  0x2f   :  { %p2124_p5 = scmp.ne.s32.totalorder %s2426_s1, %s2123_s30  ;;  %p2127_p6 = scmp.lt.u32.totalorder %s2123_s30, %s2426_s1 }
  0x31   :  { %p2129_p7 = pnand %p2127_p6, %p2124_p5 }
  0x33   :  { %2132 = shalt.err (!%p2129_p7)
}
  0x34   :  { %s2133_s13 = scalar_lea.vmem %s33_s24, 128  ;;  %p2138_p9 = scmp.lt.s32.totalorder %s33_s24, %s33_s24 }
  0x35   :  { %p2134_p8 = scmp.ne.s32.totalorder %s33_s24, %s2133_s13  ;;  %p2139_p10 = scmp.lt.s32.totalorder %s2133_s13, %s2133_s13 }
  0x37   :  { %p2140_p11 = por %p2139_p10, %p2138_p9 }
  0x39   :  { %p2141_p12 = pnand %p2140_p11, %p2134_p8 }
  0x3b   :  { %2144 = shalt.err (!%p2141_p12)
}
  0x3c   :  { %s2229_s0 = smov 64   ;;  %s2230_s14 = smov 4  }
  0x3d   :  { %38 = dma.hbm_to_vmem [thread:$0]  %s2426_s1, 128, %s33_s24, [#allocation3], %s2229_s0, %s2229_s0, %s2230_s14  }
  0x3e   :  { %s2231_s17 = smov [#allocation9]   ;;  %s2145_s23 = scalar_lea.hbm %s2428_s3, 4096 }
  0x3f   :  { %s56_s18 = sshll.u32 %s2231_s17, 4  ;;  %p2146_p13 = scmp.ne.s32.totalorder %s2428_s3, %s2145_s23  ;;  %s57_s18 = int_to_ptr.vmem [resolvable:$true] %s56_s18 }
  0x40   :  { %p2149_p0 = scmp.lt.u32.totalorder %s2145_s23, %s2428_s3 }
  0x42   :  { %p2151_p1 = pnand %p2149_p0, %p2146_p13 }
  0x44   :  { %2154 = shalt.err (!%p2151_p1)
}
  0x45   :  { %s2155_s28 = scalar_lea.vmem %s57_s18, 4096  ;;  %p2160_p3 = scmp.lt.s32.totalorder %s57_s18, %s57_s18 }
  0x46   :  { %p2156_p2 = scmp.ne.s32.totalorder %s57_s18, %s2155_s28  ;;  %p2161_p4 = scmp.lt.s32.totalorder %s2155_s28, %s2155_s28 }
  0x48   :  { %p2162_p5 = por %p2161_p4, %p2160_p3 }
  0x4a   :  { %p2163_p6 = pnand %p2162_p5, %p2156_p2 }
  0x4c   :  { %2166 = shalt.err (!%p2163_p6)
}
  0x4d   :  { %s2232_s1 = smov 256   ;;  %s2233_s24 = smov 16  }
  0x4e   :  { %62 = dma.hbm_to_vmem [thread:$0]  %s2428_s3, 4096, %s57_s18, [#allocation8], %s2232_s1, %s2232_s1, %s2233_s24  }
  0x4f   :  { %s2234_s11 = smov [#allocation12]   ;;  %s2167_s13 = scalar_lea.hbm %s2432_s7, 3072 }
  0x50   :  { %s84_s12 = sshll.u32 %s2234_s11, 4  ;;  %p2168_p7 = scmp.ne.s32.totalorder %s2432_s7, %s2167_s13  ;;  %s85_s12 = int_to_ptr.vmem [resolvable:$true] %s84_s12 }
  0x51   :  { %p2171_p8 = scmp.lt.u32.totalorder %s2167_s13, %s2432_s7 }
  0x53   :  { %p2173_p9 = pnand %p2171_p8, %p2168_p7 }
  0x55   :  { %2176 = shalt.err (!%p2173_p9)
}
  0x56   :  { %s2177_s22 = scalar_lea.vmem %s85_s12, 3072  ;;  %p2182_p11 = scmp.lt.s32.totalorder %s85_s12, %s85_s12 }
  0x57   :  { %p2178_p10 = scmp.ne.s32.totalorder %s85_s12, %s2177_s22  ;;  %p2183_p12 = scmp.lt.s32.totalorder %s2177_s22, %s2177_s22 }
  0x59   :  { %p2184_p13 = por %p2183_p12, %p2182_p11 }
  0x5b   :  { %p2185_p0 = pnand %p2184_p13, %p2178_p10 }
  0x5d   :  { %2188 = shalt.err (!%p2185_p0)
}
  0x5e   :  { %90 = dma.hbm_to_vmem [thread:$0]  %s2432_s7, 3072, %s85_s12, [#allocation11], %s2229_s0, %s2229_s0, %s2230_s14  }
  0x5f   :  { %2211 = dma.done.wait [#allocation5], 16  }
  0x60   :  { %2212 = vsyncadd [#allocation5], 4294967280 }
  0x61   :  { %2213 = dma.done.wait [#allocation3], 128  }
  0x62   :  { %2214 = vsyncadd [#allocation3], 4294967168 }
  0x63   :  { %2215 = dma.done.wait [#allocation8], 4352  }
  0x64   :  { %2216 = vsyncadd [#allocation8], 4294962944 }
  0x65   :  { %2217 = dma.done.wait [#allocation11], 15360  }
  0x66   :  { %2218 = vsyncadd [#allocation11], 4294951936 }
  0x67   :  { %111 = sfence }
  0x68   :  { %v1864_v0 = vld [vmem:[#allocation9 + $0x4] ss:$16 sps:$4 sm:$0xff]   ;;  %v1866_v1 = vld [vmem:[#allocation9] ss:$16 sps:$4 sm:$0xff]   ;;  %v2235_v2 = vmov 0   ;;  %v1890_v29 = vld [vmem:[#allocation6] sm:$0xff]  }
  0x69   :  { %371 = vmatprep.mubr.bf16.mxu0 %v2235_v2  ;;  %414 = vmatprep.mubr.bf16.mxu1 %v2235_v2  ;;  %v1867_v3 = vld [vmem:[#allocation9 + $0x24] ss:$16 sps:$4 sm:$0xff]   ;;  %v1869_v4 = vld [vmem:[#allocation9 + $0x20] ss:$16 sps:$4 sm:$0xff]   ;;  %v1888_v9 = vld [vmem:[#allocation9 + $0xc] ss:$16 sps:$4 sm:$0xff]  }
  0x6a   :  { %339 = vmatprep.subr.bf16.mxu0 %v1864_v0  ;;  %v1870_v5 = vld [vmem:[#allocation9 + $0x44] ss:$16 sps:$4 sm:$0xff]   ;;  %v1872_v6 = vld [vmem:[#allocation9 + $0x40] ss:$16 sps:$4 sm:$0xff]   ;;  %v1891_v11 = vld [vmem:[#allocation9 + $0x8] ss:$16 sps:$4 sm:$0xff]   ;;  %382 = vmatprep.subr.bf16.mxu1 %v1888_v9 }
  0x6b   :  { %340 = vmatpush1.bf16.msra.mxu0 %v1866_v1  ;;  %v1873_v7 = vld [vmem:[#allocation9 + $0x64] ss:$16 sps:$4 sm:$0xff]   ;;  %v1875_v8 = vld [vmem:[#allocation9 + $0x60] ss:$16 sps:$4 sm:$0xff]   ;;  %v1892_v12 = vld [vmem:[#allocation9 + $0x2c] ss:$16 sps:$4 sm:$0xff]   ;;  %383 = vmatpush1.bf16.msra.mxu1 %v1891_v11 }
  0x6c   :  { %341 = vmatprep.subr.bf16.mxu0 %v1867_v3  ;;  %v1876_v10 = vld [vmem:[#allocation9 + $0x84] ss:$16 sps:$4 sm:$0xff]   ;;  %v1894_v13 = vld [vmem:[#allocation9 + $0x28] ss:$16 sps:$4 sm:$0xff]   ;;  %v1878_v14 = vld [vmem:[#allocation9 + $0x80] ss:$16 sps:$4 sm:$0xff]   ;;  %384 = vmatprep.subr.bf16.mxu1 %v1892_v12 }
  0x6d   :  { %v1895_v15 = vld [vmem:[#allocation9 + $0x4c] ss:$16 sps:$4 sm:$0xff]   ;;  %v1879_v16 = vld [vmem:[#allocation9 + $0xa4] ss:$16 sps:$4 sm:$0xff]   ;;  %v1897_v17 = vld [vmem:[#allocation9 + $0x48] ss:$16 sps:$4 sm:$0xff]  }
  0x6e   :  { %v1881_v18 = vld [vmem:[#allocation9 + $0xa0] ss:$16 sps:$4 sm:$0xff]   ;;  %v1898_v19 = vld [vmem:[#allocation9 + $0x6c] ss:$16 sps:$4 sm:$0xff]   ;;  %v1882_v20 = vld [vmem:[#allocation9 + $0xc4] ss:$16 sps:$4 sm:$0xff]  }
  0x6f   :  { %342 = vmatpush1.bf16.msra.mxu0 %v1869_v4  ;;  %385 = vmatpush1.bf16.msra.mxu1 %v1894_v13  ;;  %v1900_v21 = vld [vmem:[#allocation9 + $0x68] ss:$16 sps:$4 sm:$0xff]   ;;  %v1884_v22 = vld [vmem:[#allocation9 + $0xc0] ss:$16 sps:$4 sm:$0xff]   ;;  %v1901_v23 = vld [vmem:[#allocation9 + $0x8c] ss:$16 sps:$4 sm:$0xff]  }
  0x70   :  { %343 = vmatprep.subr.bf16.mxu0 %v1870_v5  ;;  %386 = vmatprep.subr.bf16.mxu1 %v1895_v15  ;;  %v1885_v24 = vld [vmem:[#allocation9 + $0xe4] ss:$16 sps:$4 sm:$0xff]   ;;  %v1903_v25 = vld [vmem:[#allocation9 + $0x88] ss:$16 sps:$4 sm:$0xff]   ;;  %v1887_v26 = vld [vmem:[#allocation9 + $0xe0] ss:$16 sps:$4 sm:$0xff]  }
  0x71   :  { %v1904_v27 = vld [vmem:[#allocation9 + $0xac] ss:$16 sps:$4 sm:$0xff]   ;;  %v1915_v28 = vld [vmem:[#allocation10 + $0x4] ss:$12 sps:$4 sm:$0xff]   ;;  %v1906_v30 = vld [vmem:[#allocation9 + $0xa8] ss:$16 sps:$4 sm:$0xff]  }
  0x72   :  { %v1907_v31 = vld [vmem:[#allocation9 + $0xcc] ss:$16 sps:$4 sm:$0xff]   ;;  %v1909_v34 = vld [vmem:[#allocation9 + $0xc8] ss:$16 sps:$4 sm:$0xff]   ;;  %v1921_v37 = vld [vmem:[#allocation10 + $0x34] ss:$12 sps:$4 sm:$0xff]  }
  0x73   :  { %344 = vmatpush1.bf16.msra.mxu0 %v1872_v6  ;;  %387 = vmatpush1.bf16.msra.mxu1 %v1897_v17  ;;  %v1913_v32 = vld [vmem:[#allocation10] ss:$12 sps:$4 sm:$0xff]   ;;  %v1918_v33 = vld [vmem:[#allocation10 + $0x1c] ss:$12 sps:$4 sm:$0xff]   ;;  %v1916_v36 = vld [vmem:[#allocation10 + $0x18] ss:$12 sps:$4 sm:$0xff]  }
  0x74   :  { %345 = vmatprep.subr.bf16.mxu0 %v1873_v7  ;;  %388 = vmatprep.subr.bf16.mxu1 %v1898_v19  ;;  %v1910_v35 = vld [vmem:[#allocation9 + $0xec] ss:$16 sps:$4 sm:$0xff]   ;;  %v1912_v38 = vld [vmem:[#allocation9 + $0xe8] ss:$16 sps:$4 sm:$0xff]   ;;  %v1927_v45 = vld [vmem:[#allocation10 + $0x64] ss:$12 sps:$4 sm:$0xff]  }
  0x75   :  { %v1919_v39 = vld [vmem:[#allocation10 + $0x30] ss:$12 sps:$4 sm:$0xff]   ;;  %v1940_v40 = vld [vmem:[#allocation10 + $0xc8] ss:$12 sps:$4 sm:$0xff]   ;;  %v1924_v41 = vld [vmem:[#allocation10 + $0x4c] ss:$12 sps:$4 sm:$0xff]  }
  0x76   :  { %v1922_v42 = vld [vmem:[#allocation10 + $0x48] ss:$12 sps:$4 sm:$0xff]   ;;  %v1945_v44 = vld [vmem:[#allocation10 + $0xe0] ss:$12 sps:$4 sm:$0xff]   ;;  %v1950_v48 = vld [vmem:[#allocation10 + $0xf8] ss:$12 sps:$4 sm:$0xff]  }
  0x77   :  { %346 = vmatpush1.bf16.msra.mxu0 %v1875_v8  ;;  %389 = vmatpush1.bf16.msra.mxu1 %v1900_v21  ;;  %v1941_v43 = vld [vmem:[#allocation10 + $0x8] ss:$12 sps:$4 sm:$0xff]   ;;  %v1946_v46 = vld [vmem:[#allocation10 + $0x20] ss:$12 sps:$4 sm:$0xff]   ;;  %v1928_v50 = vld [vmem:[#allocation10 + $0x78] ss:$12 sps:$4 sm:$0xff]  }
  0x78   :  { %347 = vmatprep.subr.bf16.mxu0 %v1876_v10  ;;  %390 = vmatprep.subr.bf16.mxu1 %v1901_v23  ;;  %v1925_v47 = vld [vmem:[#allocation10 + $0x60] ss:$12 sps:$4 sm:$0xff]   ;;  %v1930_v49 = vld [vmem:[#allocation10 + $0x7c] ss:$12 sps:$4 sm:$0xff]   ;;  %v1951_v52 = vld [vmem:[#allocation10 + $0x38] ss:$12 sps:$4 sm:$0xff]  }
  0x79   :  { %v1933_v51 = vld [vmem:[#allocation10 + $0x94] ss:$12 sps:$4 sm:$0xff]   ;;  %v1955_v53 = vld [vmem:[#allocation10 + $0x110] ss:$12 sps:$4 sm:$0xff]   ;;  %v1936_v57 = vld [vmem:[#allocation10 + $0xac] ss:$12 sps:$4 sm:$0xff]  }
  0x7a   :  { %v1956_v54 = vld [vmem:[#allocation10 + $0x50] ss:$12 sps:$4 sm:$0xff]   ;;  %v1960_v56 = vld [vmem:[#allocation10 + $0x128] ss:$12 sps:$4 sm:$0xff]   ;;  %v1965_v60 = vld [vmem:[#allocation10 + $0x140] ss:$12 sps:$4 sm:$0xff]  }
  0x7b   :  { %348 = vmatpush1.bf16.msra.mxu0 %v1878_v14  ;;  %391 = vmatpush1.bf16.msra.mxu1 %v1903_v25  ;;  %v1931_v55 = vld [vmem:[#allocation10 + $0x90] ss:$12 sps:$4 sm:$0xff]   ;;  %v1961_v58 = vld [vmem:[#allocation10 + $0x68] ss:$12 sps:$4 sm:$0xff]   ;;  %v1966_v62 = vld [vmem:[#allocation10 + $0x80] ss:$12 sps:$4 sm:$0xff]  }
  0x7c   :  { %349 = vmatprep.subr.bf16.mxu0 %v1879_v16  ;;  %392 = vmatprep.subr.bf16.mxu1 %v1904_v27  ;;  %v1934_v59 = vld [vmem:[#allocation10 + $0xa8] ss:$12 sps:$4 sm:$0xff]   ;;  %v1939_v61 = vld [vmem:[#allocation10 + $0xc4] ss:$12 sps:$4 sm:$0xff]   ;;  %v1937_v63 = vld [vmem:[#allocation10 + $0xc0] ss:$12 sps:$4 sm:$0xff]  }
  0x7d   :  { %v1944_v0 = vld [vmem:[#allocation10 + $0xdc] ss:$12 sps:$4 sm:$0xff]   ;;  %v1942_v1 = vld [vmem:[#allocation10 + $0xd8] ss:$12 sps:$4 sm:$0xff]   ;;  %v1949_v2 = vld [vmem:[#allocation10 + $0xf4] ss:$12 sps:$4 sm:$0xff]  }
  0x7e   :  { %v1947_v3 = vld [vmem:[#allocation10 + $0xf0] ss:$12 sps:$4 sm:$0xff]   ;;  %v1954_v4 = vld [vmem:[#allocation10 + $0x10c] ss:$12 sps:$4 sm:$0xff]   ;;  %v1952_v5 = vld [vmem:[#allocation10 + $0x108] ss:$12 sps:$4 sm:$0xff]  }
  0x7f   :  { %350 = vmatpush1.bf16.msra.mxu0 %v1881_v18  ;;  %393 = vmatpush1.bf16.msra.mxu1 %v1906_v30  ;;  %v1959_v6 = vld [vmem:[#allocation10 + $0x124] ss:$12 sps:$4 sm:$0xff]   ;;  %v1957_v7 = vld [vmem:[#allocation10 + $0x120] ss:$12 sps:$4 sm:$0xff]   ;;  %v1964_v8 = vld [vmem:[#allocation10 + $0x13c] ss:$12 sps:$4 sm:$0xff]  }
  0x80   :  { %351 = vmatprep.subr.bf16.mxu0 %v1882_v20  ;;  %394 = vmatprep.subr.bf16.mxu1 %v1907_v31  ;;  %v1962_v9 = vld [vmem:[#allocation10 + $0x138] ss:$12 sps:$4 sm:$0xff]   ;;  %v1969_v10 = vld [vmem:[#allocation10 + $0x154] ss:$12 sps:$4 sm:$0xff]   ;;  %v1967_v12 = vld [vmem:[#allocation10 + $0x150] ss:$12 sps:$4 sm:$0xff]   ;;  %v153_v20 = vlaneseq }
  0x81   :  { %v1970_v11 = vld [vmem:[#allocation10 + $0x158] ss:$12 sps:$4 sm:$0xff]   ;;  %v1975_v15 = vld [vmem:[#allocation10 + $0x170] ss:$12 sps:$4 sm:$0xff]   ;;  %v1972_v16 = vld [vmem:[#allocation10 + $0x168] ss:$12 sps:$4 sm:$0xff]  }
  0x82   :  { %v1971_v13 = vld [vmem:[#allocation10 + $0x98] ss:$12 sps:$4 sm:$0xff]   ;;  %v1976_v17 = vld [vmem:[#allocation10 + $0xb0] ss:$12 sps:$4 sm:$0xff]   ;;  %v1980_v19 = vld [vmem:[#allocation10 + $0x248] ss:$12 sps:$4 sm:$0xff]  }
  0x83   :  { %352 = vmatpush1.bf16.msra.mxu0 %v1884_v22  ;;  %395 = vmatpush1.bf16.msra.mxu1 %v1909_v34  ;;  %v1974_v14 = vld [vmem:[#allocation10 + $0x16c] ss:$12 sps:$4 sm:$0xff]   ;;  %v1979_v18 = vld [vmem:[#allocation10 + $0x184] ss:$12 sps:$4 sm:$0xff]   ;;  %v2370_v21 = vshrl.u32 %v153_v20, 7  ;;  %vm2237_vm0 = vmmov 0  }
  0x84   :  { %353 = vmatprep.subr.bf16.mxu0 %v1885_v24  ;;  %396 = vmatprep.subr.bf16.mxu1 %v1910_v35  ;;  %v151_v23 = vld [vmem:[%s2429_s4] sm:$0xf]  ;;  %s1588_s25 = sld [smem:[#allocation2 + $0x1]]  ;;  %s113_s26 = sld [smem:[#allocation2]] }
  0x85   :  { %v155_v22 = vsub.s32 0, %v2370_v21  ;;  %v159_v24 = vsub.s32 1, %v2370_v21  ;;  %v163_v35 = vsub.s32 2, %v2370_v21  ;;  %v2011_v20 = vld [vmem:[#allocation10 + $0x218] ss:$12 sps:$4 sm:$0xff]  }
  0x87   :  { %354 = vmatpush1.bf16.msra.mxu0 %v1887_v26  ;;  %397 = vmatpush1.bf16.msra.mxu1 %v1912_v38  ;;  %v156_v25 = vrot.slane %v151_v23, %v155_v22  ;;  %v160_v26 = vrot.slane %v151_v23, %v159_v24  ;;  %v167_v38 = vsub.s32 3, %v2370_v21  ;;  %v2058_v21 = vld [vmem:[#allocation12 + $0x88] sm:$0xff]  }
  0x88   :  { %1094 = vmatprep.subr.bf16.mxu0 %v1915_v28  ;;  %1743 = vmatprep.subr.bf16.mxu1 %v1940_v40 }
  0x8a   :  { %372 = vmatmul.mubr.bf16.vlgmr.msra.gmra.mrb[0].mxu0 %v1890_v29  ;;  %415 = vmatmul.mubr.bf16.vlgmr.msra.gmra.mrb[0].mxu1 %v1890_v29  ;;  %s1560_s27 = ssub.f32 1.0, %s1588_s25 }
  0x8b   :  { %1095 = vmatpush1.bf16.msra.mxu0 %v1913_v32  ;;  %1744 = vmatpush3.bf16.msra.mxu1 %v1941_v43  ;;  %v1977_v43 = vld [vmem:[#allocation10 + $0x180] ss:$12 sps:$4 sm:$0xff]  }
  0x8c   :  { %1096 = vmatprep.subr.bf16.mxu0 %v1918_v33  ;;  %1745 = vmatprep.subr.bf16.mxu1 %v1945_v44  ;;  %v1981_v44 = vld [vmem:[#allocation10 + $0x188] ss:$12 sps:$4 sm:$0xff]  }
  0x8f   :  { %1097 = vmatpush1.bf16.msra.mxu0 %v1916_v36  ;;  %1746 = vmatpush3.bf16.msra.mxu1 %v1946_v46  ;;  %v1984_v46 = vld [vmem:[#allocation10 + $0x19c] ss:$12 sps:$4 sm:$0xff]  }
  0x90   :  { %1098 = vmatprep.subr.bf16.mxu0 %v1921_v37  ;;  %1747 = vmatprep.subr.bf16.mxu1 %v1950_v48  ;;  %v168_v48 = vrot.slane %v151_v23, %v167_v38  ;;  %v2029_v38 = vld [vmem:[#allocation10 + $0x2a0] ss:$12 sps:$4 sm:$0xff]  }
  0x93   :  { %1099 = vmatpush1.bf16.msra.mxu0 %v1919_v39  ;;  %1748 = vmatpush3.bf16.msra.mxu1 %v1951_v52 }
  0x94   :  { %1100 = vmatprep.subr.bf16.mxu0 %v1924_v41  ;;  %1749 = vmatprep.subr.bf16.mxu1 %v1955_v53 }
  0x97   :  { %1101 = vmatpush1.bf16.msra.mxu0 %v1922_v42  ;;  %1750 = vmatpush3.bf16.msra.mxu1 %v1956_v54  ;;  %v1989_v54 = vld [vmem:[#allocation10 + $0x1b4] ss:$12 sps:$4 sm:$0xff]  }
  0x98   :  { %1102 = vmatprep.subr.bf16.mxu0 %v1927_v45  ;;  %1751 = vmatprep.subr.bf16.mxu1 %v1960_v56  ;;  %v164_v45 = vrot.slane %v151_v23, %v163_v35  ;;  %v2014_v23 = vld [vmem:[#allocation10 + $0x22c] ss:$12 sps:$4 sm:$0xff]  }
  0x9b   :  { %1103 = vmatpush1.bf16.msra.mxu0 %v1925_v47  ;;  %1752 = vmatpush3.bf16.msra.mxu1 %v1961_v58  ;;  %v1985_v47 = vld [vmem:[#allocation10 + $0x260] ss:$12 sps:$4 sm:$0xff]  }
  0x9c   :  { %1104 = vmatprep.subr.bf16.mxu0 %v1930_v49  ;;  %1753 = vmatprep.subr.bf16.mxu1 %v1965_v60 }
  0x9f   :  { %1105 = vmatpush1.bf16.msra.mxu0 %v1928_v50  ;;  %1754 = vmatpush3.bf16.msra.mxu1 %v1966_v62  ;;  %v1982_v50 = vld [vmem:[#allocation10 + $0x198] ss:$12 sps:$4 sm:$0xff]  }
  0xa0   :  { %1106 = vmatprep.subr.bf16.mxu0 %v1933_v51  ;;  %1755 = vmatprep.subr.bf16.mxu1 %v1970_v11  ;;  %v1986_v51 = vld [vmem:[#allocation10 + $0x1a0] ss:$12 sps:$4 sm:$0xff]  }
  0xa1   :  { %v1997_v11 = vld [vmem:[#allocation10 + $0x1e0] ss:$12 sps:$4 sm:$0xff]  }
  0xa3   :  { %1107 = vmatpush1.bf16.msra.mxu0 %v1931_v55  ;;  %1756 = vmatpush3.bf16.msra.mxu1 %v1971_v13  ;;  %v1990_v55 = vld [vmem:[#allocation10 + $0x278] ss:$12 sps:$4 sm:$0xff]   ;;  %v2004_v13 = vld [vmem:[#allocation10 + $0x1fc] ss:$12 sps:$4 sm:$0xff]  }
  0xa4   :  { %1108 = vmatprep.subr.bf16.mxu0 %v1936_v57  ;;  %1757 = vmatprep.subr.bf16.mxu1 %v1975_v15  ;;  %v2002_v15 = vld [vmem:[#allocation10 + $0x1f8] ss:$12 sps:$4 sm:$0xff]  }
  0xa7   :  { %1109 = vmatpush1.bf16.msra.mxu0 %v1934_v59  ;;  %1758 = vmatpush3.bf16.msra.mxu1 %v1976_v17  ;;  %v2009_v17 = vld [vmem:[#allocation10 + $0x214] ss:$12 sps:$4 sm:$0xff]  }
  0xa8   :  { %1110 = vmatprep.subr.bf16.mxu0 %v1939_v61  ;;  %1765 = vmatprep.subr.bf16.mxu1 %v1980_v19  ;;  %v2007_v19 = vld [vmem:[#allocation10 + $0x210] ss:$12 sps:$4 sm:$0xff]  }
  0xab   :  { %1111 = vmatpush1.bf16.msra.mxu0 %v1937_v63  ;;  %v1987_v63 = vld [vmem:[#allocation10 + $0x1b0] ss:$12 sps:$4 sm:$0xff]  }
  0xac   :  { %1112 = vmatprep.subr.bf16.mxu0 %v1944_v0  ;;  %v1991_v0 = vld [vmem:[#allocation10 + $0x1b8] ss:$12 sps:$4 sm:$0xff]  }
  0xaf   :  { %1113 = vmatpush1.bf16.msra.mxu0 %v1942_v1 }
  0xb0   :  { %1114 = vmatprep.subr.bf16.mxu0 %v1949_v2  ;;  %v1994_v2 = vld [vmem:[#allocation10 + $0x1cc] ss:$12 sps:$4 sm:$0xff]  }
  0xb3   :  { %1115 = vmatpush1.bf16.msra.mxu0 %v1947_v3  ;;  %v1995_v3 = vld [vmem:[#allocation10 + $0x290] ss:$12 sps:$4 sm:$0xff]  }
  0xb4   :  { %1116 = vmatprep.subr.bf16.mxu0 %v1954_v4 }
  0xb7   :  { %1117 = vmatpush1.bf16.msra.mxu0 %v1952_v5 }
  0xb8   :  { %1118 = vmatprep.subr.bf16.mxu0 %v1959_v6 }
  0xbb   :  { %1119 = vmatpush1.bf16.msra.mxu0 %v1957_v7  ;;  %v1992_v7 = vld [vmem:[#allocation10 + $0x1c8] ss:$12 sps:$4 sm:$0xff]  }
  0xbc   :  { %1120 = vmatprep.subr.bf16.mxu0 %v1964_v8  ;;  %v1996_v8 = vld [vmem:[#allocation10 + $0x1d0] ss:$12 sps:$4 sm:$0xff]  }
  0xbf   :  { %1121 = vmatpush1.bf16.msra.mxu0 %v1962_v9  ;;  %v1999_v9 = vld [vmem:[#allocation10 + $0x1e4] ss:$12 sps:$4 sm:$0xff]  }
  0xc0   :  { %1122 = vmatprep.subr.bf16.mxu0 %v1969_v10  ;;  %v2000_v10 = vld [vmem:[#allocation10 + $0x2a8] ss:$12 sps:$4 sm:$0xff]  }
  0xc3   :  { %1123 = vmatpush1.bf16.msra.mxu0 %v1967_v12  ;;  %v2001_v12 = vld [vmem:[#allocation10 + $0x1e8] ss:$12 sps:$4 sm:$0xff]  }
  0xc4   :  { %1124 = vmatprep.subr.bf16.mxu0 %v1974_v14  ;;  %v2005_v14 = vld [vmem:[#allocation10 + $0x2c0] ss:$12 sps:$4 sm:$0xff]  }
  0xc7   :  { %1125 = vmatpush1.bf16.msra.mxu0 %v1972_v16  ;;  %v2006_v16 = vld [vmem:[#allocation10 + $0x200] ss:$12 sps:$4 sm:$0xff]  }
  0xc8   :  { %1137 = vmatprep.subr.bf16.mxu0 %v1979_v18  ;;  %v2010_v18 = vld [vmem:[#allocation10 + $0x2d8] ss:$12 sps:$4 sm:$0xff]  }
 0x15d   :  { %v373_v27 = vpop.f32.mrb[0].mxu0  ;;  %v416_v49 = vpop.f32.mrb[0].mxu1 }
 0x15e   :  { %v374_v28 = vadd.f32 %v373_v27, %v156_v25  ;;  %v375_v29 = vpop.f32.mrb[1].mxu0  ;;  %v417_v52 = vadd.f32 %v416_v49, %v164_v45  ;;  %v418_v53 = vpop.f32.mrb[1].mxu1  ;;  %v2016_v27 = vld [vmem:[#allocation10 + $0x230] ss:$12 sps:$4 sm:$0xff]  }
 0x15f   :  { %v376_v30 = vadd.f32 %v375_v29, %v160_v26  ;;  %v377_v31 = vpop.f32.mrb[2].mxu0  ;;  %v419_v56 = vadd.f32 %v418_v53, %v168_v48  ;;  %v420_v57 = vpop.f32.mrb[2].mxu1  ;;  %v2017_v29 = vld [vmem:[#allocation10 + $0x240] ss:$12 sps:$4 sm:$0xff]   ;;  %v2045_v49 = vld [vmem:[#allocation12 + $0x50] sm:$0xff]  }
 0x160   :  { %v378_v32 = vadd.f32 %v377_v31, %v156_v25  ;;  %v379_v33 = vpop.f32.mrb[3].mxu0  ;;  %v425_v36 = vmax.f32 %v374_v28, 0.0  ;;  %v427_v58 = vmax.f32 %v417_v52, 0.0  ;;  %v421_v59 = vadd.f32 %v420_v57, %v164_v45  ;;  %v422_v60 = vpop.f32.mrb[3].mxu1  ;;  %v2015_v25 = vld [vmem:[#allocation10 + $0x2f0] ss:$12 sps:$4 sm:$0xff]  }
 0x161   :  { %v380_v34 = vadd.f32 %v379_v33, %v160_v26  ;;  %v426_v39 = vmax.f32 %v376_v30, 0.0  ;;  %v428_v61 = vmax.f32 %v419_v56, 0.0  ;;  %v423_v62 = vadd.f32 %v422_v60, %v168_v48  ;;  %v2012_v26 = vld [vmem:[#allocation10 + $0x228] ss:$12 sps:$4 sm:$0xff]   ;;  %v2019_v28 = vld [vmem:[#allocation10 + $0x244] ss:$12 sps:$4 sm:$0xff]  }
 0x162   :  { %v429_v37 = vmax.f32 %v378_v32, 0.0  ;;  %v431_v1 = vmax.f32 %v421_v59, 0.0  ;;  %v2022_v30 = vld [vmem:[#allocation10 + $0x25c] ss:$12 sps:$4 sm:$0xff]   ;;  %v2020_v31 = vld [vmem:[#allocation10 + $0x258] ss:$12 sps:$4 sm:$0xff]  }
 0x163   :  { %v430_v40 = vmax.f32 %v380_v34, 0.0  ;;  %v432_v4 = vmax.f32 %v423_v62, 0.0  ;;  %v2025_v32 = vld [vmem:[#allocation10 + $0x274] ss:$12 sps:$4 sm:$0xff]   ;;  %v2023_v33 = vld [vmem:[#allocation10 + $0x270] ss:$12 sps:$4 sm:$0xff]  }
 0x164   :  { %v433_v41 = vpack.c.bf16 %v429_v37, %v425_v36  ;;  %v2385_v5 = vpack.c.bf16 %v431_v1, %v427_v58  ;;  %v2028_v34 = vld [vmem:[#allocation10 + $0x28c] ss:$12 sps:$4 sm:$0xff]   ;;  %v2026_v36 = vld [vmem:[#allocation10 + $0x288] ss:$12 sps:$4 sm:$0xff]   ;;  %v2031_v37 = vld [vmem:[#allocation10 + $0x2a4] ss:$12 sps:$4 sm:$0xff]  }
 0x165   :  { %v434_v42 = vpack.c.bf16 %v430_v40, %v426_v39  ;;  %v436_v6 = vpack.c.bf16 %v432_v4, %v428_v61  ;;  %v2034_v39 = vld [vmem:[#allocation10 + $0x2bc] ss:$12 sps:$4 sm:$0xff]   ;;  %v2032_v40 = vld [vmem:[#allocation10 + $0x2b8] ss:$12 sps:$4 sm:$0xff]   ;;  %v2053_v57 = vld [vmem:[#allocation12 + $0x70] sm:$0xff]   ;;  %v2236_v61 = vmov 0.0  }
 0x166   :  { %v2041_v45 = vld [vmem:[#allocation12 + $0x40] sm:$0xff]   ;;  %v2044_v48 = vld [vmem:[#allocation12 + $0x8] sm:$0xff]   ;;  %v2048_v52 = vld [vmem:[#allocation12 + $0x18] sm:$0xff]  }
 0x167   :  { %1126 = vmatprep.mubr.bf16.mxu0 %v434_v42  ;;  %1212 = vmatprep.mubr.bf16.mxu1 %v434_v42  ;;  %v2035_v42 = vld [vmem:[#allocation10 + $0x2d0] ss:$12 sps:$4 sm:$0xff]   ;;  %v2049_v53 = vld [vmem:[#allocation12 + $0x60] sm:$0xff]   ;;  %v2052_v56 = vld [vmem:[#allocation12 + $0x28] sm:$0xff]  }
 0x168   :  { %1127 = vmatmul.mubr.bf16.vlgmr.msra.gmra.mrb[4].mxu0 %v433_v41  ;;  %1213 = vmatmul.mubr.bf16.vlgmr.msra.gmra.mrb[4].mxu1 %v433_v41  ;;  %v2037_v41 = vld [vmem:[#allocation10 + $0x2d4] ss:$12 sps:$4 sm:$0xff]   ;;  %v2055_v59 = vld [vmem:[#allocation12 + $0x78] sm:$0xff]  }
 0x169   :  { %1138 = vmatpush1.bf16.msra.mxu0 %v1977_v43  ;;  %1766 = vmatpush3.bf16.msra.mxu1 %v1981_v44  ;;  %v2040_v43 = vld [vmem:[#allocation10 + $0x2ec] ss:$12 sps:$4 sm:$0xff]   ;;  %v2038_v44 = vld [vmem:[#allocation10 + $0x2e8] ss:$12 sps:$4 sm:$0xff]  }
 0x16a   :  { %1139 = vmatprep.subr.bf16.mxu0 %v1984_v46  ;;  %1767 = vmatprep.subr.bf16.mxu1 %v1985_v47  ;;  %v2042_v46 = vld [vmem:[#allocation12] sm:$0xff]   ;;  %v2043_v47 = vld [vmem:[#allocation12 + $0x48] sm:$0xff]   ;;  %v2054_v58 = vld [vmem:[#allocation12 + $0x30] sm:$0xff]  }
 0x16b   :  { %1253 = vmatprep.mubr.bf16.mxu1 %v436_v6  ;;  %1169 = vmatprep.mubr.bf16.mxu0 %v436_v6  ;;  %v2056_v60 = vld [vmem:[#allocation12 + $0x38] sm:$0xff]  }
 0x16c   :  { %v565_v4 = vld [vmem:[%s2431_s6] sm:$0x7] }
 0x16d   :  { %1140 = vmatpush1.bf16.msra.mxu0 %v1982_v50  ;;  %1768 = vmatpush3.bf16.msra.mxu1 %v1986_v51  ;;  %v2046_v50 = vld [vmem:[#allocation12 + $0x10] sm:$0xff]   ;;  %v2047_v51 = vld [vmem:[#allocation12 + $0x58] sm:$0xff]  }
 0x16e   :  { %1141 = vmatprep.subr.bf16.mxu0 %v1989_v54  ;;  %1769 = vmatprep.subr.bf16.mxu1 %v1990_v55  ;;  %v2050_v54 = vld [vmem:[#allocation12 + $0x20] sm:$0xff]   ;;  %v2051_v55 = vld [vmem:[#allocation12 + $0x68] sm:$0xff]  }
 0x171   :  { %1142 = vmatpush1.bf16.msra.mxu0 %v1987_v63  ;;  %1770 = vmatpush3.bf16.msra.mxu1 %v1991_v0 }
 0x172   :  { %1143 = vmatprep.subr.bf16.mxu0 %v1994_v2  ;;  %1771 = vmatprep.subr.bf16.mxu1 %v1995_v3 }
 0x175   :  { %1144 = vmatpush1.bf16.msra.mxu0 %v1992_v7  ;;  %1772 = vmatpush3.bf16.msra.mxu1 %v1996_v8 }
 0x176   :  { %1145 = vmatprep.subr.bf16.mxu0 %v1999_v9  ;;  %1773 = vmatprep.subr.bf16.mxu1 %v2000_v10 }
 0x179   :  { %1146 = vmatpush1.bf16.msra.mxu0 %v1997_v11  ;;  %1774 = vmatpush3.bf16.msra.mxu1 %v2001_v12 }
 0x17a   :  { %1147 = vmatprep.subr.bf16.mxu0 %v2004_v13  ;;  %1775 = vmatprep.subr.bf16.mxu1 %v2005_v14 }
 0x17d   :  { %1148 = vmatpush1.bf16.msra.mxu0 %v2002_v15  ;;  %1776 = vmatpush3.bf16.msra.mxu1 %v2006_v16 }
 0x17e   :  { %1149 = vmatprep.subr.bf16.mxu0 %v2009_v17  ;;  %1777 = vmatprep.subr.bf16.mxu1 %v2010_v18 }
 0x181   :  { %1150 = vmatpush1.bf16.msra.mxu0 %v2007_v19  ;;  %1778 = vmatpush3.bf16.msra.mxu1 %v2011_v20  ;;  %v570_v19 = vrot.slane %v565_v4, %v155_v22  ;;  %v574_v20 = vrot.slane %v565_v4, %v159_v24  ;;  %v2059_v22 = vld [vmem:[#allocation12 + $0x90] sm:$0xff]   ;;  %v2060_v24 = vld [vmem:[#allocation12 + $0x98] sm:$0xff]  }
 0x182   :  { %1151 = vmatprep.subr.bf16.mxu0 %v2014_v23  ;;  %1779 = vmatprep.subr.bf16.mxu1 %v2015_v25 }
 0x185   :  { %1152 = vmatpush1.bf16.msra.mxu0 %v2012_v26  ;;  %1780 = vmatpush3.bf16.msra.mxu1 %v2016_v27 }
 0x186   :  { %1153 = vmatprep.subr.bf16.mxu0 %v2019_v28  ;;  %1787 = vmatprep.subr.bf16.mxu1 %v2041_v45 }
 0x188   :  { %1254 = vmatmul.mubr.bf16.vlgmr.msra.gmra.mrb[8].mxu1 %v2385_v5 }
 0x189   :  { %1154 = vmatpush1.bf16.msra.mxu0 %v2017_v29  ;;  %1788 = vmatpush3.bf16.msra.mxu1 %v2042_v46 }
 0x18a   :  { %1155 = vmatprep.subr.bf16.mxu0 %v2022_v30  ;;  %1789 = vmatprep.subr.bf16.mxu1 %v2043_v47 }
 0x18d   :  { %1156 = vmatpush1.bf16.msra.mxu0 %v2020_v31  ;;  %1790 = vmatpush3.bf16.msra.mxu1 %v2044_v48 }
 0x18e   :  { %1157 = vmatprep.subr.bf16.mxu0 %v2025_v32  ;;  %1791 = vmatprep.subr.bf16.mxu1 %v2045_v49  ;;  %v1718_v49 = vld [vmem:[%s2433_s8] ss:$0 sm:$0xff]  ;;  %s2238_s8 = smov [#allocation13]  }
 0x18f   :  { %s1573_s5 = sshll.u32 %s2238_s8, 4  ;;  %s1574_s5 = int_to_ptr.vmem [resolvable:$true] %s1573_s5 }
 0x190   :  { %s2189_s28 = scalar_lea.vmem %s1574_s5, 256  ;;  %p2194_p2 = scmp.lt.s32.totalorder %s1574_s5, %s1574_s5 }
 0x191   :  { %1158 = vmatpush1.bf16.msra.mxu0 %v2023_v33  ;;  %1792 = vmatpush3.bf16.msra.mxu1 %v2046_v50  ;;  %p2190_p1 = scmp.ne.s32.totalorder %s1574_s5, %s2189_s28  ;;  %p2195_p3 = scmp.lt.s32.totalorder %s2189_s28, %s2189_s28 }
 0x192   :  { %1159 = vmatprep.subr.bf16.mxu0 %v2028_v34  ;;  %1793 = vmatprep.subr.bf16.mxu1 %v2047_v51 }
 0x193   :  { %p2196_p4 = por %p2195_p3, %p2194_p2 }
 0x195   :  { %1160 = vmatpush1.bf16.msra.mxu0 %v2026_v36  ;;  %1794 = vmatpush3.bf16.msra.mxu1 %v2048_v52  ;;  %p2197_p5 = pnand %p2196_p4, %p2190_p1 }
 0x196   :  { %1161 = vmatprep.subr.bf16.mxu0 %v2031_v37  ;;  %1795 = vmatprep.subr.bf16.mxu1 %v2049_v53 }
 0x199   :  { %1162 = vmatpush1.bf16.msra.mxu0 %v2029_v38  ;;  %1796 = vmatpush3.bf16.msra.mxu1 %v2050_v54  ;;  %v2057_v38 = vld [vmem:[#allocation12 + $0x80] sm:$0xff]  }
 0x19a   :  { %1163 = vmatprep.subr.bf16.mxu0 %v2034_v39  ;;  %1797 = vmatprep.subr.bf16.mxu1 %v2051_v55  ;;  %v2061_v39 = vld [vmem:[#allocation12 + $0xa0] sm:$0xff]  }
 0x19d   :  { %1164 = vmatpush1.bf16.msra.mxu0 %v2032_v40  ;;  %1798 = vmatpush3.bf16.msra.mxu1 %v2052_v56  ;;  %v2062_v40 = vld [vmem:[#allocation12 + $0xa8] sm:$0xff]  }
 0x19e   :  { %1165 = vmatprep.subr.bf16.mxu0 %v2037_v41  ;;  %1799 = vmatprep.subr.bf16.mxu1 %v2053_v57  ;;  %v2063_v41 = vld [vmem:[#allocation12 + $0xb0] sm:$0xff]  }
 0x1a1   :  { %1166 = vmatpush1.bf16.msra.mxu0 %v2035_v42  ;;  %1800 = vmatpush3.bf16.msra.mxu1 %v2054_v58  ;;  %v2064_v42 = vld [vmem:[#allocation12 + $0xb8] sm:$0xff]   ;;  %v115_v58 = vld [vmem:[#allocation7] sm:$0xff] }
 0x1a2   :  { %1167 = vmatprep.subr.bf16.mxu0 %v2040_v43  ;;  %1801 = vmatprep.subr.bf16.mxu1 %v2055_v59  ;;  %v1554_v59 = vstv %s113_s26 }
 0x1a5   :  { %1168 = vmatpush1.bf16.msra.mxu0 %v2038_v44  ;;  %1802 = vmatpush3.bf16.msra.mxu1 %v2056_v60  ;;  %v1561_v60 = vstv %s1560_s27 }
 0x1a6   :  { %1818 = vmatprep.subr.bf16.mxu1 %v2236_v61 }
 0x1a8   :  { %1170 = vmatmul.mubr.bf16.vlgmr.msra.gmra.mrb[4].mxu0 %v2385_v5  ;;  %v578_v5 = vrot.slane %v565_v4, %v163_v35 }
 0x23b   :  { %v1759_v62 = vpop.f32.mrb[4].mxu1 }
 0x23c   :  { %v1760_v63 = vpop.f32.mrb[5].mxu1 }
 0x23d   :  { %v1761_v0 = vadd.f32 %v1760_v63, %v1759_v62  ;;  %v1762_v1 = vpop.f32.mrb[6].mxu1  ;;  %v116_v62 = vld [vmem:[#allocation7 + $0x8] sm:$0xff]  ;;  %v1557_v63 = vstv %s1588_s25 }
 0x23e   :  { %v1763_v2 = vpop.f32.mrb[7].mxu1 }
 0x23f   :  { %v1764_v3 = vadd.f32 %v1763_v2, %v1762_v1  ;;  %v1215_v8 = vadd.f32 %v1761_v0, %v578_v5  ;;  %v1562_v1 = vmul.f32 %v1561_v60, %v115_v58 }
 0x241   :  { %v1218_v12 = vadd.f32 %v1764_v3, %v578_v5  ;;  %v1563_v5 = vmul.f32 %v1561_v60, %v116_v62 }
 0x25b   :  { %v1781_v6 = vpop.f32.mrb[8].mxu1 }
 0x25c   :  { %v1782_v7 = vpop.f32.mrb[9].mxu1 }
 0x25d   :  { %v1783_v9 = vadd.f32 %v1782_v7, %v1781_v6  ;;  %v1784_v10 = vpop.f32.mrb[10].mxu1 }
 0x25e   :  { %v1785_v11 = vpop.f32.mrb[11].mxu1 }
 0x25f   :  { %v1256_v13 = vadd.f32 %v1783_v9, %v1215_v8  ;;  %v1786_v14 = vadd.f32 %v1785_v11, %v1784_v10 }
 0x261   :  { %v1259_v15 = vadd.f32 %v1786_v14, %v1218_v12  ;;  %v1264_v16 = vmax.f32 %v1256_v13, 0.0 }
 0x263   :  { %v1267_v17 = vmax.f32 %v1259_v15, 0.0 }
 0x265   :  { %v1270_v18 = vpack.c.bf16 %v1267_v17, %v1264_v16 }
 0x27b   :  { %v1171_v35 = vpop.f32.mrb[4].mxu0 }
 0x27c   :  { %v1838_v23 = vadd.f32 %v1171_v35, %v570_v19  ;;  %v1173_v25 = vpop.f32.mrb[5].mxu0 }
 0x27d   :  { %v1839_v26 = vadd.f32 %v1173_v25, %v574_v20  ;;  %v1175_v27 = vpop.f32.mrb[6].mxu0 }
 0x27e   :  { %v1840_v28 = vadd.f32 %v1175_v27, %v570_v19  ;;  %v1177_v29 = vpop.f32.mrb[7].mxu0  ;;  %v1262_v31 = vmax.f32 %v1838_v23, 0.0 }
 0x27f   :  { %v1841_v30 = vadd.f32 %v1177_v29, %v574_v20  ;;  %v1263_v33 = vmax.f32 %v1839_v26, 0.0 }
 0x280   :  { %v1265_v32 = vmax.f32 %v1840_v28, 0.0 }
 0x281   :  { %v1266_v34 = vmax.f32 %v1841_v30, 0.0 }
 0x282   :  { %v1268_v36 = vpack.c.bf16 %v1265_v32, %v1262_v31 }
 0x283   :  { %v1269_v37 = vpack.c.bf16 %v1266_v34, %v1263_v33 }
 0x285   :  { %1502 = vmatprep.mubr.bf16.mxu1 %v1269_v37 }
 0x286   :  { %1503 = vmatmul.mubr.bf16.vlgmr.msra.gmra.mrb[12].mxu1 %v1268_v36 }
 0x287   :  { %1819 = vmatpush3.bf16.msra.mxu1 %v2057_v38  ;;  %1834 = vmatprep.mubr.msk.bf16.mxu1 %vm2237_vm0, %v2236_v61 }
 0x288   :  { %1820 = vmatprep.subr.bf16.mxu1 %v2236_v61 }
 0x28b   :  { %1821 = vmatpush3.bf16.msra.mxu1 %v2058_v21 }
 0x28c   :  { %1822 = vmatprep.subr.bf16.mxu1 %v2236_v61 }
 0x28f   :  { %1823 = vmatpush3.bf16.msra.mxu1 %v2059_v22 }
 0x290   :  { %1824 = vmatprep.subr.bf16.mxu1 %v2236_v61 }
 0x293   :  { %1825 = vmatpush3.bf16.msra.mxu1 %v2060_v24 }
 0x294   :  { %1826 = vmatprep.subr.bf16.mxu1 %v2236_v61 }
 0x297   :  { %1827 = vmatpush3.bf16.msra.mxu1 %v2061_v39 }
 0x298   :  { %1828 = vmatprep.subr.bf16.mxu1 %v2236_v61 }
 0x29b   :  { %1829 = vmatpush3.bf16.msra.mxu1 %v2062_v40 }
 0x29c   :  { %1830 = vmatprep.subr.bf16.mxu1 %v2236_v61 }
 0x29f   :  { %1831 = vmatpush3.bf16.msra.mxu1 %v2063_v41 }
 0x2a0   :  { %1832 = vmatprep.subr.bf16.mxu1 %v2236_v61 }
 0x2a3   :  { %1833 = vmatpush3.bf16.msra.mxu1 %v2064_v42 }
 0x2a6   :  { %1835 = vmatmul.mubr.bf16.vlgmr.msra.gmra.mrb[16].mxu1 %v1270_v18 }
 0x359   :  { %v1803_v43 = vpop.f32.mrb[12].mxu1 }
 0x35a   :  { %v1804_v44 = vpop.f32.mrb[13].mxu1 }
 0x35b   :  { %v1805_v45 = vadd.f32 %v1804_v44, %v1803_v43  ;;  %v1806_v46 = vpop.f32.mrb[14].mxu1 }
 0x35c   :  { %v1807_v47 = vpop.f32.mrb[15].mxu1 }
 0x35d   :  { %v1808_v48 = vadd.f32 %v1807_v47, %v1806_v46  ;;  %v1505_v50 = vadd.f32 %v1805_v45, %v1718_v49 }
 0x35f   :  { %v1508_v54 = vadd.f32 %v1808_v48, %v1718_v49 }
 0x379   :  { %v1545_v51 = vpop.f32.mrb[16].mxu1 }
 0x37a   :  { %v1546_v52 = vadd.f32 %v1545_v51, %v1505_v50  ;;  %v1836_v53 = vpop.f32.mrb[17].mxu1 }
 0x37b   :  { %v1548_v55 = vpop.f32.mrb[18].mxu1 }
 0x37c   :  { %2065 = vtanh.f32 %v1546_v52  ;;  %v1549_v56 = vadd.f32 %v1548_v55, %v1508_v54  ;;  %v1837_v57 = vpop.f32.mrb[19].mxu1 }
 0x37e   :  { %2067 = vtanh.f32 %v1549_v56 }
 0x386   :  { %v2066_v61 = vpop.eup %2065 }
 0x387   :  { %v1555_v0 = vmul.f32 %v2066_v61, %v1554_v59 }
 0x388   :  { %v2068_v2 = vpop.eup %2067 }
 0x389   :  { %v1556_v3 = vmul.f32 %v2068_v2, %v1554_v59  ;;  %v1558_v4 = vmul.f32 %v1557_v63, %v1555_v0 }
 0x38b   :  { %v1559_v6 = vmul.f32 %v1557_v63, %v1556_v3  ;;  %v1564_v7 = vadd.f32 %v1562_v1, %v1558_v4 }
 0x38d   :  { %v1565_v8 = vadd.f32 %v1563_v5, %v1559_v6  ;;  %1566 = vst [vmem:[#allocation13] sm:$0xff] %v1564_v7 }
 0x38f   :  { %1567 = vst [vmem:[#allocation13 + $0x8] sm:$0xff] %v1565_v8 }
 0x390   :  { %2200 = shalt.err (!%p2197_p5)
}
 0x391   :  { %s2201_s29 = scalar_lea.hbm %s2434_s9, 256 }
 0x392   :  { %p2202_p6 = scmp.ne.s32.totalorder %s2434_s9, %s2201_s29  ;;  %p2205_p7 = scmp.lt.u32.totalorder %s2201_s29, %s2434_s9 }
 0x394   :  { %p2207_p8 = pnand %p2205_p7, %p2202_p6 }
 0x396   :  { %2210 = shalt.err (!%p2207_p8)
}
 0x397   :  { %1579 = dma.vmem_to_hbm [thread:$0]  %s1574_s5, 256, %s2434_s9, [#allocation4], %s2222_s19, %s2222_s19, %s2223_s20  }
 0x398   :  { %2219 = dma.done.wait [#allocation4], 256  }
 0x399   :  { %2220 = vsyncadd [#allocation4], 4294967040 }
 0x39a   :  { %1583 = vsyncpa [#allocation3], 1 }
 0x39b   :  { %1584 = vsyncpa [#allocation8], 1 }
 0x39c   :  { %1585 = vsyncpa [#allocation11], 1 }
 0x39d   :  { %1586 = vsyncpa [#allocation4], 1 }
 0x39e   :  { %1587 = vsyncpa [#allocation5], 1 }

</bundles_post_ra>
